<compile_context>
chip_gen: v6e
topology: v6e:2x2x1
jax: 0.10.0
libtpu: 0.0.40
codegen_flags: <defaults>
</compile_context>

<pallas_src>
import functools

import numpy as np
import jax
import jax.numpy as jnp
from jax import lax
from jax.experimental import pallas as pl
from jax.experimental.pallas import tpu as pltpu


def _conv_layer(x2d, wcat_ref, b_ref, not_top, not_bot, M, WD):
    """conv3x3 + bias + ReLU on a lane-dense (M, W*C) slab (rows = images*H).

    x2d     : (M, W*C) f32 value (VMEM resident)
    wcat_ref: (W*C, 3*W*D) ref -- the three kh-taps' width-banded weights
              concatenated along the output (lane) axis; width padding baked in.
    b_ref   : (1, W*D) lane-tiled bias ref
    not_top / not_bot : (M, W*D) bool masks (False on each image's first /
              last row) implementing the vertical "same" padding.
    """
    # Single MXU push per layer: all three vertical taps at once.
    p = jnp.dot(x2d, wcat_ref[...], preferred_element_type=jnp.float32)  # (M, 3*WD)
    p0 = p[:, 0 * WD:1 * WD]   # tap kh=0: input row h-1 -> output row h
    p1 = p[:, 1 * WD:2 * WD]   # tap kh=1: input row h   -> output row h
    p2 = p[:, 2 * WD:3 * WD]   # tap kh=2: input row h+1 -> output row h
    # Vertical padding via +/-1 sublane rotation (XLU) + boundary-row mask
    # (VPU select) -- no concats, no unaligned slices.
    up = jnp.where(not_top, pltpu.roll(p0, shift=1, axis=0), 0.0)
    dn = jnp.where(not_bot, pltpu.roll(p2, shift=M - 1, axis=0), 0.0)
    return jnp.maximum(up + p1 + dn + b_ref[...], 0.0)   # bias + ReLU


def _fused_net_kernel(x_ref, w1_ref, b1_ref, w2_ref, b2_ref, o_ref, *,
                      H, W, Cout):
    M = x_ref.shape[0]                      # rows in this block = images_per_step * H
    WD = W * Cout
    x = x_ref[...].astype(jnp.float32)      # (M, W*Cin)
    # Per-image top/bottom boundary masks for the vertical shifts
    # (built once, reused by both layers).
    hmod = lax.broadcasted_iota(jnp.int32, (M, WD), 0) % H
    not_top = hmod != 0
    not_bot = hmod != (H - 1)
    y1 = _conv_layer(x, w1_ref, b1_ref, not_top, not_bot, M, WD)   # stays resident
    y2 = _conv_layer(y1, w2_ref, b2_ref, not_top, not_bot, M, WD)
    o_ref[...] = y2.astype(o_ref.dtype)


def _banded_conv_weights(w_hwio, W):
    """HWIO (3,3,C,D) -> width-banded, kh-concatenated weights (W*C, 3*W*D).

    For tap kh:  B_kh[wp*C + c, w*D + d] = w_hwio[kh, wp - w + 1, c, d]
    when 0 <= wp - w + 1 < 3 and 0 <= wp < W, else 0 (width "same" padding
    baked in).  The three taps are concatenated along the output axis so the
    kernel does a single matmul per layer.
    """
    KH, KW, C, D = w_hwio.shape
    assert KH == 3 and KW == 3, "banded form assumes 3x3 conv with padding=1"
    shift_mats = []
    for kw in range(KW):
        P = np.zeros((W, W), np.float32)
        for w in range(W):
            wp = w + kw - 1
            if 0 <= wp < W:
                P[wp, w] = 1.0
        shift_mats.append(jnp.asarray(P))
    bands = [
        sum(jnp.kron(shift_mats[kw], w_hwio[kh, kw]) for kw in range(KW))
        for kh in range(KH)
    ]
    return jnp.concatenate(bands, axis=1)          # (W*C, 3*W*D)


def _pick_images_per_step(N, H, row_target=256):
    """Largest divisor of N whose slab has <= row_target rows (multiple of 8)."""
    # TODO(synk): on v7x (2 TensorCores) prefer >=2 grid steps when N is small.
    best = None
    for b in range(1, N + 1):
        if N % b == 0 and b * H <= row_target and (b * H) % 8 == 0:
            best = b
    if best is None:
        best = N   # single step; block equals full array -> no (8,128) issue
    return best


@jax.jit
def net_module_forward(x_nchw, params):
    """NetModule.forward: two Conv3BN blocks (conv3x3 + bias + ReLU), fused."""
    N, Cin, H, W = x_nchw.shape
    Cout = params["b1"].shape[0]
    WD = W * Cout

    # NCHW -> NHWC -> lane-dense rows-of-images slab (N*H, W*Cin)
    x2d = jnp.transpose(x_nchw, (0, 2, 3, 1)).reshape(N * H, W * Cin)

    # OIHW -> HWIO -> banded single-matmul weights; bias tiled lane-dense.
    w1 = jnp.transpose(params["w1"], (2, 3, 1, 0))
    w2 = jnp.transpose(params["w2"], (2, 3, 1, 0))
    bw1 = _banded_conv_weights(w1, W)              # (W*Cin,  3*W*Cout)
    bw2 = _banded_conv_weights(w2, W)              # (W*Cout, 3*W*Cout)
    b1 = jnp.tile(params["b1"], W).reshape(1, WD)
    b2 = jnp.tile(params["b2"], W).reshape(1, WD)

    imgs = _pick_images_per_step(N, H)
    rows = imgs * H                                 # matmul M dim per grid step
    grid = (N // imgs,)

    kernel = functools.partial(_fused_net_kernel, H=H, W=W, Cout=Cout)
    out2d = pl.pallas_call(
        kernel,
        out_shape=jax.ShapeDtypeStruct((N * H, WD), x_nchw.dtype),
        grid=grid,
        in_specs=[
            pl.BlockSpec((rows, W * Cin), lambda g: (g, 0)),
            pl.BlockSpec((W * Cin, 3 * WD), lambda g: (0, 0)),
            pl.BlockSpec((1, WD), lambda g: (0, 0)),
            pl.BlockSpec((WD, 3 * WD), lambda g: (0, 0)),
            pl.BlockSpec((1, WD), lambda g: (0, 0)),
        ],
        out_specs=pl.BlockSpec((rows, WD), lambda g: (g, 0)),
        compiler_params=pltpu.CompilerParams(
            dimension_semantics=("parallel",)),
    )(x2d, bw1, b1, bw2, b2)

    # lane-dense slab -> NHWC -> NCHW
    return jnp.transpose(out2d.reshape(N, H, W, Cout), (0, 3, 1, 2))


def init_params(key, in_ch, out_ch):
    """Deterministic init (shapes match nn.Conv2d(in, out, 3, padding=1))."""
    k1, k2, k3, k4 = jax.random.split(key, 4)
    fan1 = in_ch * 9
    fan2 = out_ch * 9
    w1 = jax.random.normal(k1, (out_ch, in_ch, 3, 3), jnp.float32) * (fan1 ** -0.5)
    b1 = jax.random.normal(k2, (out_ch,), jnp.float32) * 0.01
    w2 = jax.random.normal(k3, (out_ch, out_ch, 3, 3), jnp.float32) * (fan2 ** -0.5)
    b2 = jax.random.normal(k4, (out_ch,), jnp.float32) * 0.01
    return {"w1": w1, "b1": b1, "w2": w2, "b2": b2}


def _reference_forward(x_nchw, params):
    """Pure-JAX reference (lax.conv) for correctness checking."""
    def conv(x, w, b):
        y = lax.conv_general_dilated(
            x, w, window_strides=(1, 1), padding=((1, 1), (1, 1)),
            dimension_numbers=("NCHW", "OIHW", "NCHW"))
        return jnp.maximum(y + b[None, :, None, None], 0.0)
    x = conv(x_nchw, params["w1"], params["b1"])
    x = conv(x, params["w2"], params["b2"])
    return x


if __name__ == "__main__":
    key = jax.random.PRNGKey(0)
    kx, kp = jax.random.split(key)

    N, Cin, H, W = 2, 4, 16, 16
    Cout = 8

    x = jax.random.normal(kx, (N, Cin, H, W), jnp.float32)
    params = init_params(kp, Cin, Cout)

    out = net_module_forward(x, params)
    out = jax.block_until_ready(out)

    ref = _reference_forward(x, params)
    assert out.shape == (N, Cout, H, W), out.shape
    assert jnp.allclose(out, ref, atol=1e-4, rtol=1e-4), "mismatch vs reference"

    print("KERNEL_OK")
</pallas_src>

<mosaic_0001>
module attributes {stable_mosaic.version = 11 : i64} {
  func.func @_fused_net_kernel(%arg0: i32, %arg1: memref<32x64xf32, #tpu.memory_space<vmem>>, %arg2: memref<64x384xf32, #tpu.memory_space<vmem>>, %arg3: memref<1x128xf32, #tpu.memory_space<vmem>>, %arg4: memref<128x384xf32, #tpu.memory_space<vmem>>, %arg5: memref<1x128xf32, #tpu.memory_space<vmem>>, %arg6: memref<32x128xf32, #tpu.memory_space<vmem>>) attributes {dimension_semantics = [#tpu.dimension_semantics<parallel>], iteration_bounds = array<i64: 1>, scalar_prefetch = 0 : i64, scratch_operands = 0 : i64, tpu.core_type = #tpu.core_type<tc>, window_params = [{transform_indices = @transform_0, window_bounds = array<i64: 32, 64>}, {pipeline_mode = #tpu.pipeline_mode<synchronous>, transform_indices = @transform_1, window_bounds = array<i64: 64, 384>}, {pipeline_mode = #tpu.pipeline_mode<synchronous>, transform_indices = @transform_2, window_bounds = array<i64: 1, 128>}, {pipeline_mode = #tpu.pipeline_mode<synchronous>, transform_indices = @transform_3, window_bounds = array<i64: 128, 384>}, {pipeline_mode = #tpu.pipeline_mode<synchronous>, transform_indices = @transform_4, window_bounds = array<i64: 1, 128>}, {transform_indices = @transform_5, window_bounds = array<i64: 32, 128>}]} {
    %c0 = arith.constant 0 : index
    %c0_0 = arith.constant 0 : index
    %0 = vector.load %arg1[%c0, %c0_0] : memref<32x64xf32, #tpu.memory_space<vmem>>, vector<32x64xf32>
    %1 = tpu.iota {dimensions = array<i32: 0>} : vector<32x128xi32>
    %c16_i32 = arith.constant 16 : i32
    %c0_i32 = arith.constant 0 : i32
    %2 = arith.cmpi eq, %c16_i32, %c0_i32 : i32
    %c1_i32 = arith.constant 1 : i32
    %3 = arith.select %2, %c1_i32, %c16_i32 : i32
    %4 = vector.broadcast %3 : i32 to vector<32x128xi32>
    %5 = arith.remsi %1, %4 : vector<32x128xi32>
    %c0_i32_1 = arith.constant 0 : i32
    %6 = vector.broadcast %c0_i32_1 : i32 to vector<32x128xi32>
    %7 = arith.cmpi ne, %5, %6 : vector<32x128xi32>
    %c0_i32_2 = arith.constant 0 : i32
    %8 = vector.broadcast %c0_i32_2 : i32 to vector<32x128xi32>
    %9 = arith.cmpi slt, %5, %8 : vector<32x128xi32>
    %c0_i32_3 = arith.constant 0 : i32
    %10 = arith.cmpi slt, %3, %c0_i32_3 : i32
    %11 = vector.broadcast %10 : i1 to vector<32x128xi1>
    %12 = vector.broadcast %11 : vector<32x128xi1> to vector<32x128xi1>
    %13 = arith.xori %9, %12 : vector<32x128xi1>
    %14 = arith.andi %13, %7 : vector<32x128xi1>
    %15 = vector.broadcast %3 : i32 to vector<32x128xi32>
    %16 = arith.addi %5, %15 : vector<32x128xi32>
    %17 = arith.select %14, %16, %5 : vector<32x128xi1>, vector<32x128xi32>
    %c0_i32_4 = arith.constant 0 : i32
    %18 = vector.broadcast %c0_i32_4 : i32 to vector<32x128xi32>
    %19 = arith.cmpi ne, %17, %18 : vector<32x128xi32>
    %c15_i32 = arith.constant 15 : i32
    %20 = vector.broadcast %c15_i32 : i32 to vector<32x128xi32>
    %21 = arith.cmpi ne, %17, %20 : vector<32x128xi32>
    %c0_5 = arith.constant 0 : index
    %c0_6 = arith.constant 0 : index
    %22 = vector.load %arg2[%c0_5, %c0_6] : memref<64x384xf32, #tpu.memory_space<vmem>>, vector<64x384xf32>
    %cst = arith.constant dense<0.000000e+00> : vector<32x384xf32>
    %23 = tpu.matmul %0, %22, %cst {dimension_numbers = #tpu.dot_dimension_numbers<[1], [0], [0], [1], [0, 0, 1, 1], [], []>} : vector<32x64xf32>, vector<64x384xf32>, vector<32x384xf32> -> vector<32x384xf32>
    %24 = vector.extract_strided_slice %23 {offsets = [0, 0], sizes = [32, 128], strides = [1, 1]} : vector<32x384xf32> to vector<32x128xf32>
    %25 = vector.extract_strided_slice %23 {offsets = [0, 128], sizes = [32, 128], strides = [1, 1]} : vector<32x384xf32> to vector<32x128xf32>
    %26 = vector.extract_strided_slice %23 {offsets = [0, 256], sizes = [32, 128], strides = [1, 1]} : vector<32x384xf32> to vector<32x128xf32>
    %c1_i32_7 = arith.constant 1 : i32
    %27 = tpu.dynamic_rotate %24 by %c1_i32_7 dim 0 : vector<32x128xf32>, i32 -> vector<32x128xf32>
    %cst_8 = arith.constant 0.000000e+00 : f32
    %28 = vector.broadcast %cst_8 : f32 to vector<32x128xf32>
    %29 = arith.select %19, %27, %28 : vector<32x128xi1>, vector<32x128xf32>
    %c31_i32 = arith.constant 31 : i32
    %30 = tpu.dynamic_rotate %26 by %c31_i32 dim 0 : vector<32x128xf32>, i32 -> vector<32x128xf32>
    %cst_9 = arith.constant 0.000000e+00 : f32
    %31 = vector.broadcast %cst_9 : f32 to vector<32x128xf32>
    %32 = arith.select %21, %30, %31 : vector<32x128xi1>, vector<32x128xf32>
    %33 = arith.addf %29, %25 : vector<32x128xf32>
    %34 = arith.addf %33, %32 : vector<32x128xf32>
    %c0_10 = arith.constant 0 : index
    %c0_11 = arith.constant 0 : index
    %35 = vector.load %arg3[%c0_10, %c0_11] : memref<1x128xf32, #tpu.memory_space<vmem>>, vector<1x128xf32>
    %36 = vector.broadcast %35 : vector<1x128xf32> to vector<32x128xf32>
    %37 = arith.addf %34, %36 : vector<32x128xf32>
    %cst_12 = arith.constant 0.000000e+00 : f32
    %38 = vector.broadcast %cst_12 : f32 to vector<32x128xf32>
    %39 = arith.maximumf %37, %38 : vector<32x128xf32>
    %c0_13 = arith.constant 0 : index
    %c0_14 = arith.constant 0 : index
    %40 = vector.load %arg4[%c0_13, %c0_14] : memref<128x384xf32, #tpu.memory_space<vmem>>, vector<128x384xf32>
    %cst_15 = arith.constant dense<0.000000e+00> : vector<32x384xf32>
    %41 = tpu.matmul %39, %40, %cst_15 {dimension_numbers = #tpu.dot_dimension_numbers<[1], [0], [0], [1], [0, 0, 1, 1], [], []>} : vector<32x128xf32>, vector<128x384xf32>, vector<32x384xf32> -> vector<32x384xf32>
    %42 = vector.extract_strided_slice %41 {offsets = [0, 0], sizes = [32, 128], strides = [1, 1]} : vector<32x384xf32> to vector<32x128xf32>
    %43 = vector.extract_strided_slice %41 {offsets = [0, 128], sizes = [32, 128], strides = [1, 1]} : vector<32x384xf32> to vector<32x128xf32>
    %44 = vector.extract_strided_slice %41 {offsets = [0, 256], sizes = [32, 128], strides = [1, 1]} : vector<32x384xf32> to vector<32x128xf32>
    %c1_i32_16 = arith.constant 1 : i32
    %45 = tpu.dynamic_rotate %42 by %c1_i32_16 dim 0 : vector<32x128xf32>, i32 -> vector<32x128xf32>
    %cst_17 = arith.constant 0.000000e+00 : f32
    %46 = vector.broadcast %cst_17 : f32 to vector<32x128xf32>
    %47 = arith.select %19, %45, %46 : vector<32x128xi1>, vector<32x128xf32>
    %c31_i32_18 = arith.constant 31 : i32
    %48 = tpu.dynamic_rotate %44 by %c31_i32_18 dim 0 : vector<32x128xf32>, i32 -> vector<32x128xf32>
    %cst_19 = arith.constant 0.000000e+00 : f32
    %49 = vector.broadcast %cst_19 : f32 to vector<32x128xf32>
    %50 = arith.select %21, %48, %49 : vector<32x128xi1>, vector<32x128xf32>
    %51 = arith.addf %47, %43 : vector<32x128xf32>
    %52 = arith.addf %51, %50 : vector<32x128xf32>
    %c0_20 = arith.constant 0 : index
    %c0_21 = arith.constant 0 : index
    %53 = vector.load %arg5[%c0_20, %c0_21] : memref<1x128xf32, #tpu.memory_space<vmem>>, vector<1x128xf32>
    %54 = vector.broadcast %53 : vector<1x128xf32> to vector<32x128xf32>
    %55 = arith.addf %52, %54 : vector<32x128xf32>
    %cst_22 = arith.constant 0.000000e+00 : f32
    %56 = vector.broadcast %cst_22 : f32 to vector<32x128xf32>
    %57 = arith.maximumf %55, %56 : vector<32x128xf32>
    %c0_23 = arith.constant 0 : index
    %c0_24 = arith.constant 0 : index
    %58 = vector.load %arg6[%c0_23, %c0_24] : memref<32x128xf32, #tpu.memory_space<vmem>>, vector<32x128xf32>
    tpu.vector_store %arg6[%c0_23, %c0_24], %57 {strides = array<i32>} : memref<32x128xf32, #tpu.memory_space<vmem>>, vector<32x128xf32>,
    return
  }
  func.func @transform_0(%arg0: i32) -> (i32, i32) {
    %c0_i32 = arith.constant 0 : i32
    %c0_i32_0 = arith.constant 0 : i32
    return %arg0, %c0_i32 : i32, i32
  }
  func.func @transform_1(%arg0: i32) -> (i32, i32) {
    %c0_i32 = arith.constant 0 : i32
    %c0_i32_0 = arith.constant 0 : i32
    %c0_i32_1 = arith.constant 0 : i32
    return %c0_i32, %c0_i32_0 : i32, i32
  }
  func.func @transform_2(%arg0: i32) -> (i32, i32) {
    %c0_i32 = arith.constant 0 : i32
    %c0_i32_0 = arith.constant 0 : i32
    %c0_i32_1 = arith.constant 0 : i32
    return %c0_i32, %c0_i32_0 : i32, i32
  }
  func.func @transform_3(%arg0: i32) -> (i32, i32) {
    %c0_i32 = arith.constant 0 : i32
    %c0_i32_0 = arith.constant 0 : i32
    %c0_i32_1 = arith.constant 0 : i32
    return %c0_i32, %c0_i32_0 : i32, i32
  }
  func.func @transform_4(%arg0: i32) -> (i32, i32) {
    %c0_i32 = arith.constant 0 : i32
    %c0_i32_0 = arith.constant 0 : i32
    %c0_i32_1 = arith.constant 0 : i32
    return %c0_i32, %c0_i32_0 : i32, i32
  }
  func.func @transform_5(%arg0: i32) -> (i32, i32) {
    %c0_i32 = arith.constant 0 : i32
    %c0_i32_0 = arith.constant 0 : i32
    return %arg0, %c0_i32 : i32, i32
  }
}

</mosaic_0001>

<bundles_post_ra>
// kernel: tile.13
= control target key start
LH: loop header
LB: loop body
LE: loop exit
PB: predicated region body
PF: predicated region fallthrough
CT: control target
= control target key end

     0   :  { %s28_s0 = inlined_call_operand.vmem [shape: f32[8], index: 0, kind: input, shape index: {}]   ;;  %s29_s1 = inlined_call_operand.vmem [shape: f32[16,8], index: 1, kind: output, shape index: {}]  }
   0x1   :  { %v4_v0 = vld [vmem:[%s28_s0] ss:$0 sm:$0xff] }
   0x2   :  { %5 = vst [vmem:[%s29_s1] sm:$0xff] %v4_v0  ;;  %8 = vst [vmem:[%s29_s1 + $0x8] sm:$0xff] %v4_v0 }

// kernel: tile.14
= control target key start
LH: loop header
LB: loop body
LE: loop exit
PB: predicated region body
PF: predicated region fallthrough
CT: control target
= control target key end

     0   :  { %s133_s10 = smov 120   ;;  %s134_s11 = smov 104   ;;  %vm3_vm0 = vcmask 64512   ;;  %vm9_vm1 = vcmask 1048512   ;;  %vm15_vm2 = vcmask 982912   ;;  %vm21_vm3 = vcmask 917312   ;;  %s209_s0 = inlined_call_operand.vmem [shape: f32[16,8], index: 0, kind: input, shape index: {}]   ;;  %s210_s1 = inlined_call_operand.vmem [shape: f32[1,128], index: 1, kind: output, shape index: {}]  }
   0x1   :  { %v103_v0 = vld [vmem:[%s209_s0 + $0xf] sm:$0x1]   ;;  %v105_v1 = vld [vmem:[%s209_s0 + $0xd] sm:$0x1]   ;;  %v104_v2 = vld [vmem:[%s209_s0 + $0xe] sm:$0x1]  }
   0x2   :  { %7 = vrot.lane.b32.xlu0 %v103_v0, %s133_s10  ;;  %19 = vrot.lane.b32.xlu1 %v105_v1, %s134_s11  ;;  %v106_v3 = vld [vmem:[%s209_s0 + $0xc] sm:$0x1]   ;;  %s135_s16 = smov 112   ;;  %s136_s17 = smov 96   ;;  %v107_v4 = vld [vmem:[%s209_s0 + $0xb] sm:$0x1]  }
   0x3   :  { %v108_v5 = vld [vmem:[%s209_s0 + $0xa] sm:$0x1]   ;;  %v2_v6 = vld [vmem:[%s209_s0] sm:$0x1]   ;;  %s137_s24 = smov 88   ;;  %s138_s25 = smov 80  }
   0x4   :  { %4 = vst.msk [vmem:[#allocation0] sm:$0x1] %vm3_vm0, %v2_v6   ;;  %v109_v7 = vld [vmem:[%s209_s0 + $0x9] sm:$0x1]   ;;  %v110_v8 = vld [vmem:[%s209_s0 + $0x8] sm:$0x1]  }
   0x5   :  { %s139_s30 = smov 72   ;;  %s140_s2 = smov 64   ;;  %v111_v9 = vld [vmem:[%s209_s0 + $0x7] sm:$0x1]   ;;  %v112_v10 = vld [vmem:[%s209_s0 + $0x6] sm:$0x1]  }
   0x6   :  { %13 = vrot.lane.b32.xlu0 %v104_v2, %s135_s16  ;;  %25 = vrot.lane.b32.xlu1 %v106_v3, %s136_s17  ;;  %s141_s7 = smov 56   ;;  %s142_s8 = smov 48   ;;  %v113_v11 = vld [vmem:[%s209_s0 + $0x5] sm:$0x1]   ;;  %v114_v12 = vld [vmem:[%s209_s0 + $0x4] sm:$0x1]  }
   0x7   :  { %s143_s13 = smov 40   ;;  %s144_s14 = smov 32   ;;  %v115_v13 = vld [vmem:[%s209_s0 + $0x3] sm:$0x1]   ;;  %v116_v14 = vld [vmem:[%s209_s0 + $0x2] sm:$0x1]  }
   0x8   :  { %s145_s19 = smov 24   ;;  %s146_s20 = smov 16   ;;  %v117_v15 = vld [vmem:[%s209_s0 + $0x1] sm:$0x1]   ;;  %vm27_vm4 = vcmask 851712   ;;  %vm33_vm5 = vcmask 786112  }
   0x9   :  { %s147_s0 = smov 8   ;;  %vm39_vm6 = vcmask 720512   ;;  %vm45_vm7 = vcmask 654912   ;;  %vm51_vm8 = vcmask 589312   ;;  %vm57_vm9 = vcmask 523712  }
   0xa   :  { %31 = vrot.lane.b32.xlu0 %v107_v4, %s137_s24  ;;  %37 = vrot.lane.b32.xlu1 %v108_v5, %s138_s25  ;;  %vm63_vm10 = vcmask 458112   ;;  %vm69_vm11 = vcmask 392512   ;;  %vm75_vm12 = vcmask 326912   ;;  %vm81_vm13 = vcmask 261312  }
   0xb   :  { %vm87_vm14 = vcmask 195712   ;;  %vm93_vm15 = vcmask 130112  }
   0xe   :  { %43 = vrot.lane.b32.xlu0 %v109_v7, %s139_s30  ;;  %49 = vrot.lane.b32.xlu1 %v110_v8, %s140_s2 }
  0x12   :  { %55 = vrot.lane.b32.xlu0 %v111_v9, %s141_s7  ;;  %61 = vrot.lane.b32.xlu1 %v112_v10, %s142_s8 }
  0x16   :  { %67 = vrot.lane.b32.xlu0 %v113_v11, %s143_s13  ;;  %73 = vrot.lane.b32.xlu1 %v114_v12, %s144_s14 }
  0x1a   :  { %79 = vrot.lane.b32.xlu0 %v115_v13, %s145_s19  ;;  %85 = vrot.lane.b32.xlu1 %v116_v14, %s146_s20 }
  0x1e   :  { %91 = vrot.lane.b32.xlu0 %v117_v15, %s147_s0 }
  0x74   :  { %v8_v16 = vpop.permute.xlu0 %7   ;;  %v20_v17 = vpop.permute.xlu1 %19  }
  0x75   :  { %10 = vst.msk [vmem:[#allocation0] sm:$0x1] %vm9_vm1, %v8_v16  }
  0x78   :  { %v14_v18 = vpop.permute.xlu0 %13   ;;  %v26_v19 = vpop.permute.xlu1 %25  }
  0x79   :  { %16 = vst.msk [vmem:[#allocation0] sm:$0x1] %vm15_vm2, %v14_v18  }
  0x7a   :  { %22 = vst.msk [vmem:[#allocation0] sm:$0x1] %vm21_vm3, %v20_v17  }
  0x7b   :  { %28 = vst.msk [vmem:[#allocation0] sm:$0x1] %vm27_vm4, %v26_v19  }
  0x7c   :  { %v32_v20 = vpop.permute.xlu0 %31   ;;  %v38_v21 = vpop.permute.xlu1 %37  }
  0x7d   :  { %34 = vst.msk [vmem:[#allocation0] sm:$0x1] %vm33_vm5, %v32_v20  }
  0x7e   :  { %40 = vst.msk [vmem:[#allocation0] sm:$0x1] %vm39_vm6, %v38_v21  }
  0x80   :  { %v44_v22 = vpop.permute.xlu0 %43   ;;  %v50_v23 = vpop.permute.xlu1 %49  }
  0x81   :  { %46 = vst.msk [vmem:[#allocation0] sm:$0x1] %vm45_vm7, %v44_v22  }
  0x82   :  { %52 = vst.msk [vmem:[#allocation0] sm:$0x1] %vm51_vm8, %v50_v23  }
  0x84   :  { %v56_v24 = vpop.permute.xlu0 %55   ;;  %v62_v25 = vpop.permute.xlu1 %61  }
  0x85   :  { %58 = vst.msk [vmem:[#allocation0] sm:$0x1] %vm57_vm9, %v56_v24  }
  0x86   :  { %64 = vst.msk [vmem:[#allocation0] sm:$0x1] %vm63_vm10, %v62_v25  }
  0x88   :  { %v68_v26 = vpop.permute.xlu0 %67   ;;  %v74_v27 = vpop.permute.xlu1 %73  }
  0x89   :  { %70 = vst.msk [vmem:[#allocation0] sm:$0x1] %vm69_vm11, %v68_v26  }
  0x8a   :  { %76 = vst.msk [vmem:[#allocation0] sm:$0x1] %vm75_vm12, %v74_v27  }
  0x8c   :  { %v80_v28 = vpop.permute.xlu0 %79   ;;  %v86_v29 = vpop.permute.xlu1 %85  }
  0x8d   :  { %82 = vst.msk [vmem:[#allocation0] sm:$0x1] %vm81_vm13, %v80_v28  }
  0x8e   :  { %88 = vst.msk [vmem:[#allocation0] sm:$0x1] %vm87_vm14, %v86_v29  }
  0x90   :  { %v92_v30 = vpop.permute.xlu0 %91  }
  0x91   :  { %94 = vst.msk [vmem:[#allocation0] sm:$0x1] %vm93_vm15, %v92_v30  }
  0x98   :  { %v99_v31 = vld [vmem:[#allocation0] sm:$0x1] }
  0x99   :  { %102 = vst [vmem:[%s210_s1] sm:$0x1] %v99_v31 }

// kernel: net_module_forward.1
= control target key start
LH: loop header
LB: loop body
LE: loop exit
PB: predicated region body
PF: predicated region fallthrough
CT: control target
= control target key end

     0   :  { %v725_v3 = vmov 0.0   ;;  %vm109_vm0 = vcmask 523264   ;;  %s1090_s1 = inlined_call_operand.vmem [shape: f32[64,384], index: 1, kind: input, shape index: {}]   ;;  %s1091_s0 = inlined_call_operand.vmem [shape: f32[32,64], index: 0, kind: input, shape index: {}]   ;;  %s1092_s3 = inlined_call_operand.vmem [shape: f32[128,384], index: 3, kind: input, shape index: {}]   ;;  %s1093_s2 = inlined_call_operand.vmem [shape: f32[1,128], index: 2, kind: input, shape index: {}]   ;;  %s1094_s4 = inlined_call_operand.vmem [shape: f32[1,128], index: 4, kind: input, shape index: {}]   ;;  %s1095_s5 = inlined_call_operand.vmem [shape: f32[32,128], index: 5, kind: output, shape index: {}]  }
   0x1   :  { %v107_v0 = vld [vmem:[%s1090_s1 + $0xb0] sm:$0xff]  ;;  %v108_v1 = vld [vmem:[%s1090_s1 + $0xb8] sm:$0xff]  ;;  %v106_v2 = vld [vmem:[%s1090_s1 + $0xa8] sm:$0xff]  ;;  %186 = vmatprep.mubr.f32.mxu0 %v725_v3 }
   0x2   :  { %138 = vmatprep.subr.mxu0 %v107_v0  ;;  %664 = vmatprep.subr.mxu1 %v108_v1  ;;  %v104_v4 = vld [vmem:[%s1090_s1 + $0x98] sm:$0xff]  ;;  %v105_v5 = vld [vmem:[%s1090_s1 + $0xa0] sm:$0xff]  ;;  %v103_v6 = vld [vmem:[%s1090_s1 + $0x90] sm:$0xff] }
   0x3   :  { %139 = vmatpush1.msra.mxu0 %v106_v2  ;;  %665 = vmatpush3.msra.mxu1 %v108_v1  ;;  %v101_v7 = vld [vmem:[%s1090_s1 + $0x80] sm:$0xff]  ;;  %v102_v8 = vld [vmem:[%s1090_s1 + $0x88] sm:$0xff]  ;;  %v100_v9 = vld [vmem:[%s1090_s1 + $0x78] sm:$0xff] }
   0x4   :  { %140 = vmatprep.subr.mxu0 %v104_v4  ;;  %666 = vmatprep.subr.mxu1 %v105_v5  ;;  %v98_v10 = vld [vmem:[%s1090_s1 + $0x68] sm:$0xff]  ;;  %v99_v11 = vld [vmem:[%s1090_s1 + $0x70] sm:$0xff]  ;;  %v97_v12 = vld [vmem:[%s1090_s1 + $0x60] sm:$0xff] }
   0x5   :  { %141 = vmatpush1.msra.mxu0 %v103_v6  ;;  %667 = vmatpush3.msra.mxu1 %v105_v5  ;;  %v95_v13 = vld [vmem:[%s1090_s1 + $0x50] sm:$0xff]  ;;  %v96_v14 = vld [vmem:[%s1090_s1 + $0x58] sm:$0xff]  ;;  %v94_v15 = vld [vmem:[%s1090_s1 + $0x48] sm:$0xff] }
   0x6   :  { %142 = vmatprep.subr.mxu0 %v101_v7  ;;  %668 = vmatprep.subr.mxu1 %v102_v8  ;;  %v92_v16 = vld [vmem:[%s1090_s1 + $0x38] sm:$0xff]  ;;  %v93_v17 = vld [vmem:[%s1090_s1 + $0x40] sm:$0xff]  ;;  %v91_v18 = vld [vmem:[%s1090_s1 + $0x30] sm:$0xff] }
   0x7   :  { %143 = vmatpush1.msra.mxu0 %v100_v9  ;;  %669 = vmatpush3.msra.mxu1 %v102_v8  ;;  %v89_v19 = vld [vmem:[%s1090_s1 + $0x20] sm:$0xff]  ;;  %v90_v20 = vld [vmem:[%s1090_s1 + $0x28] sm:$0xff]  ;;  %v88_v21 = vld [vmem:[%s1090_s1 + $0x18] sm:$0xff] }
   0x8   :  { %144 = vmatprep.subr.mxu0 %v98_v10  ;;  %670 = vmatprep.subr.mxu1 %v99_v11  ;;  %v86_v22 = vld [vmem:[%s1090_s1 + $0x8] sm:$0xff]  ;;  %v87_v23 = vld [vmem:[%s1090_s1 + $0x10] sm:$0xff]  ;;  %v85_v24 = vld [vmem:[%s1090_s1] sm:$0xff] }
   0x9   :  { %145 = vmatpush1.msra.mxu0 %v97_v12  ;;  %671 = vmatpush3.msra.mxu1 %v99_v11  ;;  %v20_v25 = vld [vmem:[%s1091_s0] sm:$0xff]  ;;  %v21_v26 = vld [vmem:[%s1091_s0 + $0x8] sm:$0xff]  ;;  %v22_v27 = vld [vmem:[%s1091_s0 + $0x10] sm:$0xff] }
   0xa   :  { %146 = vmatprep.subr.mxu0 %v95_v13  ;;  %672 = vmatprep.subr.mxu1 %v96_v14  ;;  %v391_v28 = vld [vmem:[%s1092_s3 + $0x170] sm:$0xff]  ;;  %v390_v29 = vld [vmem:[%s1092_s3 + $0x168] sm:$0xff]  ;;  %v392_v30 = vld [vmem:[%s1092_s3 + $0x178] sm:$0xff] }
   0xb   :  { %147 = vmatpush1.msra.mxu0 %v94_v15  ;;  %673 = vmatpush3.msra.mxu1 %v96_v14  ;;  %v388_v31 = vld [vmem:[%s1092_s3 + $0x158] sm:$0xff]  ;;  %v387_v33 = vld [vmem:[%s1092_s3 + $0x150] sm:$0xff]  ;;  %v389_v34 = vld [vmem:[%s1092_s3 + $0x160] sm:$0xff]  ;;  %v24_v14 = vlaneseq }
   0xc   :  { %148 = vmatprep.subr.mxu0 %v92_v16  ;;  %674 = vmatprep.subr.mxu1 %v93_v17  ;;  %v23_v32 = vld [vmem:[%s1091_s0 + $0x18] sm:$0xff]  ;;  %v385_v35 = vld [vmem:[%s1092_s3 + $0x140] sm:$0xff]  ;;  %v386_v37 = vld [vmem:[%s1092_s3 + $0x148] sm:$0xff] }
   0xd   :  { %149 = vmatpush1.msra.mxu0 %v91_v18  ;;  %675 = vmatpush3.msra.mxu1 %v93_v17  ;;  %v384_v36 = vld [vmem:[%s1092_s3 + $0x138] sm:$0xff]  ;;  %v382_v38 = vld [vmem:[%s1092_s3 + $0x128] sm:$0xff]  ;;  %v381_v39 = vld [vmem:[%s1092_s3 + $0x120] sm:$0xff]  ;;  %v997_v15 = vshrl.u32 %v24_v14, 7 }
   0xe   :  { %150 = vmatprep.subr.mxu0 %v89_v19  ;;  %676 = vmatprep.subr.mxu1 %v90_v20  ;;  %v383_v40 = vld [vmem:[%s1092_s3 + $0x130] sm:$0xff]  ;;  %v378_v42 = vld [vmem:[%s1092_s3 + $0x108] sm:$0xff]  ;;  %v380_v43 = vld [vmem:[%s1092_s3 + $0x118] sm:$0xff] }
   0xf   :  { %151 = vmatpush1.msra.mxu0 %v88_v21  ;;  %677 = vmatpush3.msra.mxu1 %v90_v20  ;;  %v379_v41 = vld [vmem:[%s1092_s3 + $0x110] sm:$0xff]  ;;  %v376_v44 = vld [vmem:[%s1092_s3 + $0xf8] sm:$0xff]  ;;  %v377_v46 = vld [vmem:[%s1092_s3 + $0x100] sm:$0xff]  ;;  %v26_v17 = vadd.s32 8, %v997_v15  ;;  %v27_v19 = vadd.s32 16, %v997_v15  ;;  %vm300_vm1 = vcmp.lt.s32.totalorder %v997_v15, 1 }
  0x10   :  { %152 = vmatprep.subr.mxu0 %v86_v22  ;;  %678 = vmatprep.subr.mxu1 %v87_v23  ;;  %v375_v45 = vld [vmem:[%s1092_s3 + $0xf0] sm:$0xff]  ;;  %v373_v47 = vld [vmem:[%s1092_s3 + $0xe0] sm:$0xff]  ;;  %v372_v48 = vld [vmem:[%s1092_s3 + $0xd8] sm:$0xff]  ;;  %vm313_vm2 = vcmp.lt.s32.totalorder %v997_v15, 7 }
  0x11   :  { %153 = vmatpush1.msra.mxu0 %v85_v24  ;;  %679 = vmatpush3.msra.mxu1 %v87_v23  ;;  %v374_v49 = vld [vmem:[%s1092_s3 + $0xe8] sm:$0xff]  ;;  %v369_v51 = vld [vmem:[%s1092_s3 + $0xc0] sm:$0xff]  ;;  %v371_v52 = vld [vmem:[%s1092_s3 + $0xd0] sm:$0xff]  ;;  %v40_v23 = vand.u32 15, %v26_v17 }
  0x12   :  { %680 = vmatprep.mubr.msk.f32.mxu1 %vm109_vm0, %v20_v25  ;;  %622 = vmatmul.mubr.msk.f32.vlgmr.msra.gmra.mxu0 %vm109_vm0, %v20_v25  ;;  %v370_v50 = vld [vmem:[%s1092_s3 + $0xc8] sm:$0xff]  ;;  %v367_v53 = vld [vmem:[%s1092_s3 + $0xb0] sm:$0xff]  ;;  %v368_v55 = vld [vmem:[%s1092_s3 + $0xb8] sm:$0xff] }
  0x13   :  { %681 = vmatmul.mubr.msk.f32.vlgmr.msra.gmra.mxu1 %vm109_vm0, %v21_v26  ;;  %192 = vmatprep.mubr.f32.mxu0 %v725_v3  ;;  %v366_v54 = vld [vmem:[%s1092_s3 + $0xa8] sm:$0xff]  ;;  %v364_v56 = vld [vmem:[%s1092_s3 + $0x98] sm:$0xff]  ;;  %v363_v57 = vld [vmem:[%s1092_s3 + $0x90] sm:$0xff]  ;;  %vm1004_vm3 = vcmp.ne.s32.totalorder %v40_v23, 15 }
  0x14   :  { %683 = vmatprep.mubr.msk.f32.mxu1 %vm109_vm0, %v22_v27  ;;  %393 = vmatprep.subr.mxu0 %v391_v28  ;;  %v365_v58 = vld [vmem:[%s1092_s3 + $0xa0] sm:$0xff]  ;;  %v360_v60 = vld [vmem:[%s1092_s3 + $0x78] sm:$0xff]  ;;  %v362_v61 = vld [vmem:[%s1092_s3 + $0x88] sm:$0xff] }
  0x15   :  { %394 = vmatpush1.msra.mxu0 %v390_v29  ;;  %686 = vmatprep.subr.mxu1 %v392_v30  ;;  %v361_v59 = vld [vmem:[%s1092_s3 + $0x80] sm:$0xff]  ;;  %v358_v62 = vld [vmem:[%s1092_s3 + $0x68] sm:$0xff]  ;;  %v359_v0 = vld [vmem:[%s1092_s3 + $0x70] sm:$0xff]  ;;  %v28_v29 = vadd.s32 24, %v997_v15 }
  0x16   :  { %623 = vmatmul.mubr.msk.f32.gmra.mxu0 %vm109_vm0, %v21_v26  ;;  %395 = vmatprep.subr.mxu0 %v388_v31  ;;  %v357_v63 = vld [vmem:[%s1092_s3 + $0x60] sm:$0xff]  ;;  %v355_v1 = vld [vmem:[%s1092_s3 + $0x50] sm:$0xff]  ;;  %v354_v2 = vld [vmem:[%s1092_s3 + $0x48] sm:$0xff]  ;;  %v47_v26 = vand.u32 15, %v27_v19 }
  0x17   :  { %684 = vmatmul.mubr.msk.f32.gmra.mxu1 %vm109_vm0, %v23_v32  ;;  %198 = vmatprep.mubr.f32.mxu0 %v725_v3  ;;  %v356_v4 = vld [vmem:[%s1092_s3 + $0x58] sm:$0xff]  ;;  %v351_v6 = vld [vmem:[%s1092_s3 + $0x30] sm:$0xff]  ;;  %v353_v7 = vld [vmem:[%s1092_s3 + $0x40] sm:$0xff] }
  0x18   :  { %687 = vmatpush3.msra.mxu1 %v392_v30  ;;  %396 = vmatpush1.msra.mxu0 %v387_v33  ;;  %v352_v5 = vld [vmem:[%s1092_s3 + $0x38] sm:$0xff]  ;;  %v349_v8 = vld [vmem:[%s1092_s3 + $0x20] sm:$0xff]  ;;  %v350_v10 = vld [vmem:[%s1092_s3 + $0x28] sm:$0xff]  ;;  %vm1010_vm4 = vcmp.ne.s32.totalorder %v47_v26, 0 }
  0x19   :  { %688 = vmatprep.subr.mxu1 %v389_v34  ;;  %397 = vmatprep.subr.mxu0 %v385_v35  ;;  %v348_v9 = vld [vmem:[%s1092_s3 + $0x18] sm:$0xff]  ;;  %v346_v11 = vld [vmem:[%s1092_s3 + $0x8] sm:$0xff]  ;;  %v345_v12 = vld [vmem:[%s1092_s3] sm:$0xff] }
  0x1a   :  { %624 = vmatmul.mubr.msk.f32.gmra.mxu0 %vm109_vm0, %v22_v27  ;;  %689 = vmatpush3.msra.mxu1 %v389_v34  ;;  %v347_v13 = vld [vmem:[%s1092_s3 + $0x10] sm:$0xff] }
  0x1b   :  { %204 = vmatprep.mubr.f32.mxu0 %v725_v3  ;;  %398 = vmatpush1.msra.mxu0 %v384_v36 }
  0x1c   :  { %690 = vmatprep.subr.mxu1 %v386_v37  ;;  %399 = vmatprep.subr.mxu0 %v382_v38  ;;  %v33_v38 = vand.u32 15, %v997_v15 }
  0x1d   :  { %691 = vmatpush3.msra.mxu1 %v386_v37  ;;  %400 = vmatpush1.msra.mxu0 %v381_v39 }
  0x1e   :  { %625 = vmatmul.mubr.msk.f32.gmra.mxu0 %vm109_vm0, %v23_v32  ;;  %692 = vmatprep.subr.mxu1 %v383_v40  ;;  %vm1023_vm5 = vcmp.ne.s32.totalorder %v33_v38, 0 }
  0x1f   :  { %457 = vmatprep.mubr.f32.mxu0 %v725_v3  ;;  %401 = vmatprep.subr.mxu0 %v379_v41 }
  0x20   :  { %693 = vmatpush3.msra.mxu1 %v383_v40  ;;  %402 = vmatpush1.msra.mxu0 %v378_v42 }
  0x21   :  { %694 = vmatprep.subr.mxu1 %v380_v43  ;;  %403 = vmatprep.subr.mxu0 %v376_v44 }
  0x22   :  { %695 = vmatpush3.msra.mxu1 %v380_v43  ;;  %404 = vmatpush1.msra.mxu0 %v375_v45  ;;  %v54_v43 = vand.u32 15, %v28_v29 }
  0x23   :  { %696 = vmatprep.subr.mxu1 %v377_v46  ;;  %405 = vmatprep.subr.mxu0 %v373_v47 }
  0x24   :  { %697 = vmatpush3.msra.mxu1 %v377_v46  ;;  %406 = vmatpush1.msra.mxu0 %v372_v48  ;;  %vm1029_vm6 = vcmp.ne.s32.totalorder %v54_v43, 15 }
  0x25   :  { %698 = vmatprep.subr.mxu1 %v374_v49  ;;  %407 = vmatprep.subr.mxu0 %v370_v50 }
  0x26   :  { %699 = vmatpush3.msra.mxu1 %v374_v49  ;;  %408 = vmatpush1.msra.mxu0 %v369_v51 }
  0x27   :  { %700 = vmatprep.subr.mxu1 %v371_v52  ;;  %409 = vmatprep.subr.mxu0 %v367_v53 }
  0x28   :  { %701 = vmatpush3.msra.mxu1 %v371_v52  ;;  %410 = vmatpush1.msra.mxu0 %v366_v54 }
  0x29   :  { %702 = vmatprep.subr.mxu1 %v368_v55  ;;  %411 = vmatprep.subr.mxu0 %v364_v56 }
  0x2a   :  { %703 = vmatpush3.msra.mxu1 %v368_v55  ;;  %412 = vmatpush1.msra.mxu0 %v363_v57 }
  0x2b   :  { %704 = vmatprep.subr.mxu1 %v365_v58  ;;  %413 = vmatprep.subr.mxu0 %v361_v59 }
  0x2c   :  { %705 = vmatpush3.msra.mxu1 %v365_v58  ;;  %414 = vmatpush1.msra.mxu0 %v360_v60 }
  0x2d   :  { %706 = vmatprep.subr.mxu1 %v362_v61  ;;  %415 = vmatprep.subr.mxu0 %v358_v62 }
  0x2e   :  { %707 = vmatpush3.msra.mxu1 %v362_v61  ;;  %416 = vmatpush1.msra.mxu0 %v357_v63  ;;  %v630_v61 = vld [vmem:[%s1093_s2] ss:$0 sm:$0xff] }
  0x2f   :  { %708 = vmatprep.subr.mxu1 %v359_v0  ;;  %417 = vmatprep.subr.mxu0 %v355_v1 }
  0x30   :  { %709 = vmatpush3.msra.mxu1 %v359_v0  ;;  %418 = vmatpush1.msra.mxu0 %v354_v2 }
  0x31   :  { %710 = vmatprep.subr.mxu1 %v356_v4  ;;  %419 = vmatprep.subr.mxu0 %v352_v5 }
  0x32   :  { %711 = vmatpush3.msra.mxu1 %v356_v4  ;;  %420 = vmatpush1.msra.mxu0 %v351_v6 }
  0x33   :  { %712 = vmatprep.subr.mxu1 %v353_v7  ;;  %421 = vmatprep.subr.mxu0 %v349_v8 }
  0x34   :  { %713 = vmatpush3.msra.mxu1 %v353_v7  ;;  %422 = vmatpush1.msra.mxu0 %v348_v9 }
  0x35   :  { %714 = vmatprep.subr.mxu1 %v350_v10  ;;  %423 = vmatprep.subr.mxu0 %v346_v11 }
  0x36   :  { %715 = vmatpush3.msra.mxu1 %v350_v10  ;;  %424 = vmatpush1.msra.mxu0 %v345_v12 }
  0x37   :  { %716 = vmatprep.subr.mxu1 %v347_v13 }
  0x38   :  { %717 = vmatpush3.msra.mxu1 %v347_v13 }
  0xd2   :  { %v188_v16 = vpop.f32.mrf.mxu0 }
  0xd3   :  { %v682_v18 = vpop.f32.mrf.mxu1  ;;  %v296_v30 = vrot.slane %v188_v16, 7 }
  0xd4   :  { %v190_v20 = vpop.f32.mrf.mxu0  ;;  %v310_v27 = vrot.slane %v682_v18, 1 }
  0xd5   :  { %v277_v21 = vpop.f32.mrf.mxu1 }
  0xd6   :  { %v194_v22 = vpop.f32.mrf.mxu0  ;;  %v309_v39 = vrot.slane %v277_v21, 1 }
  0xd7   :  { %v297_v24 = vrot.slane %v194_v22, 7  ;;  %v685_v25 = vpop.f32.mrf.mxu1 }
  0xd8   :  { %v196_v28 = vpop.f32.mrf.mxu0  ;;  %v312_v40 = vrot.slane %v685_v25, 1  ;;  %v316_v1 = vsel %vm313_vm2, %v309_v39, %v310_v27 }
  0xd9   :  { %v287_v31 = vpop.f32.mrf.mxu1  ;;  %v303_v35 = vsel %vm300_vm1, %v296_v30, %v297_v24 }
  0xda   :  { %v311_v33 = vrot.slane %v287_v31, 1  ;;  %v200_v34 = vpop.f32.mrf.mxu0  ;;  %v323_v45 = vadd.f32 %v303_v35, %v196_v28  ;;  %v317_v55 = vsel %vm313_vm2, %v312_v40, %v309_v39 }
  0xdb   :  { %v298_v36 = vrot.slane %v200_v34, 7  ;;  %v321_v0 = vsel %vm1029_vm6, %v317_v55, 0.0  ;;  %v631_v34 = vld [vmem:[%s1094_s4] ss:$0 sm:$0xff] }
  0xdc   :  { %v315_v41 = vsel %vm313_vm2, %v310_v27, %v311_v33  ;;  %v202_v42 = vpop.f32.mrf.mxu0  ;;  %v314_v52 = vsel %vm313_vm2, %v311_v33, %v312_v40 }
  0xdd   :  { %v302_v44 = vsel %vm300_vm1, %v297_v24, %v298_v36  ;;  %v319_v48 = vsel %vm1004_vm3, %v315_v41, 0.0 }
  0xde   :  { %v307_v46 = vsel %vm1010_vm4, %v302_v44, 0.0  ;;  %v206_v47 = vpop.f32.mrf.mxu0  ;;  %v327_v58 = vadd.f32 %v323_v45, %v319_v48 }
  0xdf   :  { %v324_v49 = vadd.f32 %v307_v46, %v202_v42  ;;  %v299_v51 = vrot.slane %v206_v47, 7 }
  0xe0   :  { %v208_v54 = vpop.f32.mrf.mxu0  ;;  %v338_v4 = vadd.f32 %v630_v61, %v327_v58 }
  0xe1   :  { %v304_v56 = vsel %vm300_vm1, %v299_v51, %v296_v30  ;;  %v301_v57 = vsel %vm300_vm1, %v298_v36, %v299_v51  ;;  %v328_v62 = vadd.f32 %v324_v49, %v314_v52 }
  0xe2   :  { %v305_v59 = vsel %vm1023_vm5, %v304_v56, 0.0  ;;  %v325_v60 = vadd.f32 %v301_v57, %v208_v54  ;;  %v342_v9 = vmax.f32 %v338_v4, 0.0 }
  0xe3   :  { %v322_v63 = vadd.f32 %v305_v59, %v190_v20  ;;  %v339_v7 = vadd.f32 %v630_v61, %v328_v62 }
  0xe4   :  { %v329_v5 = vadd.f32 %v325_v60, %v321_v0 }
  0xe5   :  { %v326_v2 = vadd.f32 %v322_v63, %v316_v1  ;;  %v343_v11 = vmax.f32 %v339_v7, 0.0 }
  0xe6   :  { %v340_v10 = vadd.f32 %v630_v61, %v329_v5 }
  0xe7   :  { %v337_v6 = vadd.f32 %v630_v61, %v326_v2 }
  0xe8   :  { %v344_v12 = vmax.f32 %v340_v10, 0.0 }
  0xe9   :  { %v341_v8 = vmax.f32 %v337_v6, 0.0 }
  0xeb   :  { %458 = vmatmul.mubr.f32.vlgmr.msra.gmra.mxu0 %v341_v8  ;;  %718 = vmatprep.mubr.f32.mxu1 %v341_v8 }
  0xec   :  { %719 = vmatmul.mubr.f32.vlgmr.msra.gmra.mxu1 %v342_v9  ;;  %463 = vmatprep.mubr.f32.mxu0 %v725_v3 }
  0xed   :  { %721 = vmatprep.mubr.f32.mxu1 %v343_v11 }
  0xef   :  { %464 = vmatmul.mubr.f32.gmra.mxu0 %v342_v9 }
  0xf0   :  { %722 = vmatmul.mubr.f32.gmra.mxu1 %v344_v12  ;;  %469 = vmatprep.mubr.f32.mxu0 %v725_v3 }
  0xf3   :  { %470 = vmatmul.mubr.f32.gmra.mxu0 %v343_v11 }
  0xf4   :  { %475 = vmatprep.mubr.f32.mxu0 %v725_v3 }
  0xf7   :  { %476 = vmatmul.mubr.f32.gmra.mxu0 %v344_v12 }
 0x1ab   :  { %v459_v13 = vpop.f32.mrf.mxu0 }
 0x1ac   :  { %v720_v14 = vpop.f32.mrf.mxu1  ;;  %v567_v19 = vrot.slane %v459_v13, 7 }
 0x1ad   :  { %v461_v16 = vpop.f32.mrf.mxu0  ;;  %v580_v25 = vrot.slane %v720_v14, 1 }
 0x1ae   :  { %v548_v17 = vpop.f32.mrf.mxu1 }
 0x1af   :  { %v465_v18 = vpop.f32.mrf.mxu0  ;;  %v579_v36 = vrot.slane %v548_v17, 1 }
 0x1b0   :  { %v568_v20 = vrot.slane %v465_v18, 7  ;;  %v723_v21 = vpop.f32.mrf.mxu1 }
 0x1b1   :  { %v467_v22 = vpop.f32.mrf.mxu0  ;;  %v582_v29 = vrot.slane %v723_v21, 1  ;;  %v585_v56 = vsel %vm313_vm2, %v579_v36, %v580_v25 }
 0x1b2   :  { %v573_v23 = vsel %vm300_vm1, %v567_v19, %v568_v20  ;;  %v558_v24 = vpop.f32.mrf.mxu1 }
 0x1b3   :  { %v581_v26 = vrot.slane %v558_v24, 1  ;;  %v471_v27 = vpop.f32.mrf.mxu0  ;;  %v592_v3 = vadd.f32 %v573_v23, %v467_v22  ;;  %v586_v45 = vsel %vm313_vm2, %v582_v29, %v579_v36 }
 0x1b4   :  { %v569_v28 = vrot.slane %v471_v27, 7  ;;  %v590_v55 = vsel %vm1029_vm6, %v586_v45, 0.0 }
 0x1b5   :  { %v584_v30 = vsel %vm313_vm2, %v580_v25, %v581_v26  ;;  %v473_v31 = vpop.f32.mrf.mxu0  ;;  %v583_v32 = vsel %vm313_vm2, %v581_v26, %v582_v29 }
 0x1b6   :  { %v588_v33 = vsel %vm1004_vm3, %v584_v30, 0.0  ;;  %v572_v35 = vsel %vm300_vm1, %v568_v20, %v569_v28 }
 0x1b7   :  { %v596_v38 = vadd.f32 %v592_v3, %v588_v33  ;;  %v577_v39 = vsel %vm1010_vm4, %v572_v35, 0.0  ;;  %v477_v40 = vpop.f32.mrf.mxu0 }
 0x1b8   :  { %v593_v41 = vadd.f32 %v577_v39, %v473_v31  ;;  %v570_v42 = vrot.slane %v477_v40, 7 }
 0x1b9   :  { %v607_v43 = vadd.f32 %v631_v34, %v596_v38  ;;  %v479_v44 = vpop.f32.mrf.mxu0 }
 0x1ba   :  { %v597_v46 = vadd.f32 %v593_v41, %v583_v32  ;;  %v574_v47 = vsel %vm300_vm1, %v570_v42, %v567_v19  ;;  %v571_v48 = vsel %vm300_vm1, %v569_v28, %v570_v42 }
 0x1bb   :  { %v611_v37 = vmax.f32 %v607_v43, 0.0  ;;  %v575_v49 = vsel %vm1023_vm5, %v574_v47, 0.0  ;;  %v594_v51 = vadd.f32 %v571_v48, %v479_v44 }
 0x1bc   :  { %v608_v52 = vadd.f32 %v631_v34, %v597_v46  ;;  %v591_v54 = vadd.f32 %v575_v49, %v461_v16 }
 0x1bd   :  { %615 = vst [vmem:[%s1095_s5 + $0x8] sm:$0xff] %v611_v37  ;;  %v598_v57 = vadd.f32 %v594_v51, %v590_v55 }
 0x1be   :  { %v612_v58 = vmax.f32 %v608_v52, 0.0  ;;  %v595_v59 = vadd.f32 %v591_v54, %v585_v56 }
 0x1bf   :  { %v609_v60 = vadd.f32 %v631_v34, %v598_v57 }
 0x1c0   :  { %616 = vst [vmem:[%s1095_s5 + $0x10] sm:$0xff] %v612_v58  ;;  %v606_v50 = vadd.f32 %v631_v34, %v595_v59 }
 0x1c1   :  { %v613_v61 = vmax.f32 %v609_v60, 0.0 }
 0x1c2   :  { %v610_v62 = vmax.f32 %v606_v50, 0.0 }
 0x1c3   :  { %617 = vst [vmem:[%s1095_s5 + $0x18] sm:$0xff] %v613_v61 }
 0x1c4   :  { %614 = vst [vmem:[%s1095_s5] sm:$0xff] %v610_v62 }

</bundles_post_ra>
